<compile_context>
chip_gen: v5e
topology: v5e:2x2
jax: 0.10.0
libtpu: 0.0.40
codegen_flags: <defaults>
</compile_context>

<pallas_src>
import functools

import jax
import jax.numpy as jnp
import numpy as np
from jax.experimental import pallas as pl
from jax.experimental.pallas import tpu as pltpu

_EPS = 1e-5


# ---------------------------------------------------------------------------
# Pass A: fused degrees + layer-1 reduce.
#   T1  = De^{-1} H^T (Dv^{-1/2} X W1)   [E, Fh]   (resident accumulator)
#   dei = 1 / (H^T 1 + eps)              [E, 1]    (resident accumulator)
# ---------------------------------------------------------------------------
def _degree_reduce_kernel(x_ref, h_ref, w_ref, t_ref, dei_ref, *, compute_dtype):
    i = pl.program_id(0)

    @pl.when(i == 0)
    def _():
        t_ref[...] = jnp.zeros_like(t_ref)
        dei_ref[...] = jnp.zeros_like(dei_ref)

    Hb = h_ref[...]                                                 # [tm, E]
    Hb32 = Hb.astype(jnp.float32)

    # Dv^{-1/2} for this row tile (XLU lane reduce + EUP rsqrt; ~free slots).
    dvs = jax.lax.rsqrt(jnp.sum(Hb32, axis=1, keepdims=True) + _EPS)  # [tm,1]

    # Hyperedge degrees as a COLUMN (H^T @ 1 on the MXU, f32 accumulation) so
    # the epilogue can row-scale T without a lane->sublane transpose.
    ones_col = jnp.ones((Hb.shape[0], 1), dtype=Hb.dtype)
    dei_ref[...] += jax.lax.dot_general(
        Hb, ones_col, (((0,), (0,)), ((), ())),
        preferred_element_type=jnp.float32)                         # [E, 1]

    Xb = x_ref[...]
    Wc = w_ref[...].astype(compute_dtype)
    if Xb.shape[1] <= Wc.shape[1]:
        # Apply Dv^{-1/2} to the narrower operand (layer 1: Fin <= hid).
        xw = jnp.dot((dvs * Xb).astype(compute_dtype), Wc,
                     preferred_element_type=jnp.float32)            # [tm, Fh]
    else:
        xw = dvs * jnp.dot(Xb.astype(compute_dtype), Wc,
                           preferred_element_type=jnp.float32)

    # H_tile^T @ xw without materializing a transpose: contract node axis (0)
    # of both operands directly on the MXU.
    t_ref[...] += jax.lax.dot_general(
        Hb.astype(compute_dtype), xw.astype(compute_dtype),
        (((0,), (0,)), ((), ())),
        preferred_element_type=jnp.float32)                         # [E, Fh]

    @pl.when(i == pl.num_programs(0) - 1)
    def _():
        dei = 1.0 / (dei_ref[...] + _EPS)                           # [E, 1]
        dei_ref[...] = dei
        t_ref[...] = t_ref[...] * dei            # fold De^{-1} into T1 once


# ---------------------------------------------------------------------------
# Pass B: fused layer-1 scatter + layer-2 reduce (h1 never touches HBM).
#   h1_tile = relu(Dv^{-1/2} (H_tile @ T1) + b1)
#   T2     += De^{-1}-fold-later of H_tile^T (Dv^{-1/2} h1_tile W2)
# ---------------------------------------------------------------------------
def _scatter_reduce_kernel(h_ref, t1_ref, b1_ref, w2_ref, dei_ref, t2_ref, *,
                           compute_dtype):
    i = pl.program_id(0)

    @pl.when(i == 0)
    def _():
        t2_ref[...] = jnp.zeros_like(t2_ref)

    Hb = h_ref[...]                                                 # [tm, E]
    dvs = jax.lax.rsqrt(
        jnp.sum(Hb.astype(jnp.float32), axis=1, keepdims=True) + _EPS)
    Hc = Hb.astype(compute_dtype)

    # Layer-1 scatter (T1 already carries De^{-1}); h1 stays in VMEM/vregs.
    agg1 = jnp.dot(Hc, t1_ref[...].astype(compute_dtype),
                   preferred_element_type=jnp.float32)              # [tm, Fh]
    h1 = jnp.maximum(dvs * agg1 + b1_ref[...], 0.0)                 # [tm, Fh]

    # Layer-2 reduce.
    W2c = w2_ref[...].astype(compute_dtype)
    if h1.shape[1] <= W2c.shape[1]:
        xw2 = jnp.dot((dvs * h1).astype(compute_dtype), W2c,
                      preferred_element_type=jnp.float32)           # [tm, Fo]
    else:
        xw2 = dvs * jnp.dot(h1.astype(compute_dtype), W2c,
                            preferred_element_type=jnp.float32)

    t2_ref[...] += jax.lax.dot_general(
        Hc, xw2.astype(compute_dtype), (((0,), (0,)), ((), ())),
        preferred_element_type=jnp.float32)                         # [E, Fo]

    @pl.when(i == pl.num_programs(0) - 1)
    def _():
        t2_ref[...] = t2_ref[...] * dei_ref[...]   # fold De^{-1} into T2 once


# ---------------------------------------------------------------------------
# Pass C: layer-2 scatter.
#   out_tile = relu(Dv^{-1/2} (H_tile @ T2) + b2)
# ---------------------------------------------------------------------------
def _scatter_kernel(h_ref, t_ref, b_ref, o_ref, *, compute_dtype):
    Hb = h_ref[...]
    dvs = jax.lax.rsqrt(
        jnp.sum(Hb.astype(jnp.float32), axis=1, keepdims=True) + _EPS)
    agg = jnp.dot(Hb.astype(compute_dtype), t_ref[...].astype(compute_dtype),
                  preferred_element_type=jnp.float32)               # [tm, Fo]
    o_ref[...] = jnp.maximum(dvs * agg + b_ref[...], 0.0).astype(o_ref.dtype)


# ---------------------------------------------------------------------------
# VMEM-budgeted tiling.
# ---------------------------------------------------------------------------
def _vmem_budget_bytes():
    try:
        cap = pltpu.get_tpu_info().vmem_capacity_bytes
    except Exception:
        cap = 64 << 20                       # conservative (v7x per-TC VMEM)
    return int(cap) * 3 // 4                 # headroom for compiler scratch


def _pick_block_rows(N, E, Fi, Fh, Fo, budget):
    itemsize = 4
    resident = itemsize * (Fi * Fh + Fh * Fo + E * (Fh + Fo) + E + Fh + Fo)
    per_row = 2 * 2 * itemsize * (Fi + E + Fo)     # double-buffered streams
    avail = max(budget - resident, per_row * 8)
    cap = max(8, min(avail // per_row, 1024, N))
    tm = (int(cap) // 8) * 8
    while tm >= 8:
        if N % tm == 0:
            return tm
        tm -= 8
    # TODO(synk): pad N to a multiple of 8 and mask instead of a single
    # whole-array block for very large ragged N.
    return N


# ---------------------------------------------------------------------------
# Full BranchHGCN forward.
# ---------------------------------------------------------------------------
def branch_hgcn(X, H, W1, b1, W2, b2, *, block_rows=None,
                compute_dtype=jnp.float32):
    N, E = H.shape
    Fi, Fh = W1.shape
    Fo = W2.shape[1]
    b1 = jnp.reshape(b1, (1, Fh))
    b2 = jnp.reshape(b2, (1, Fo))

    budget = _vmem_budget_bytes()
    if block_rows is None:
        block_rows = _pick_block_rows(N, E, Fi, Fh, Fo, budget)
    assert N % block_rows == 0, "node count must be divisible by block_rows"
    tm = block_rows
    grid = (N // tm,)

    cp_arb = pltpu.CompilerParams(dimension_semantics=("arbitrary",),
                                  vmem_limit_bytes=int(budget))
    cp_par = pltpu.CompilerParams(dimension_semantics=("parallel",),
                                  vmem_limit_bytes=int(budget))

    # Pass A: degrees + layer-1 reduce (T1 and dei resident across the grid).
    t1, dei = pl.pallas_call(
        functools.partial(_degree_reduce_kernel, compute_dtype=compute_dtype),
        grid=grid,
        in_specs=[pl.BlockSpec((tm, Fi), lambda i: (i, 0)),
                  pl.BlockSpec((tm, E), lambda i: (i, 0)),
                  pl.BlockSpec((Fi, Fh), lambda i: (0, 0))],
        out_specs=(pl.BlockSpec((E, Fh), lambda i: (0, 0)),
                   pl.BlockSpec((E, 1), lambda i: (0, 0))),
        out_shape=(jax.ShapeDtypeStruct((E, Fh), jnp.float32),
                   jax.ShapeDtypeStruct((E, 1), jnp.float32)),
        compiler_params=cp_arb,
    )(X, H, W1)

    # Pass B: layer-1 scatter fused with layer-2 reduce (h1 VMEM-only).
    t2 = pl.pallas_call(
        functools.partial(_scatter_reduce_kernel, compute_dtype=compute_dtype),
        grid=grid,
        in_specs=[pl.BlockSpec((tm, E), lambda i: (i, 0)),
                  pl.BlockSpec((E, Fh), lambda i: (0, 0)),
                  pl.BlockSpec((1, Fh), lambda i: (0, 0)),
                  pl.BlockSpec((Fh, Fo), lambda i: (0, 0)),
                  pl.BlockSpec((E, 1), lambda i: (0, 0))],
        out_specs=pl.BlockSpec((E, Fo), lambda i: (0, 0)),
        out_shape=jax.ShapeDtypeStruct((E, Fo), jnp.float32),
        compiler_params=cp_arb,
    )(H, t1, b1, W2, dei)

    # Pass C: layer-2 scatter (independent row tiles -> parallel axis).
    out = pl.pallas_call(
        functools.partial(_scatter_kernel, compute_dtype=compute_dtype),
        grid=grid,
        in_specs=[pl.BlockSpec((tm, E), lambda i: (i, 0)),
                  pl.BlockSpec((E, Fo), lambda i: (0, 0)),
                  pl.BlockSpec((1, Fo), lambda i: (0, 0))],
        out_specs=pl.BlockSpec((tm, Fo), lambda i: (i, 0)),
        out_shape=jax.ShapeDtypeStruct((N, Fo), jnp.float32),
        compiler_params=cp_par,
    )(H, t2, b2)
    return out


# ---------------------------------------------------------------------------
# Helpers / reference.
# ---------------------------------------------------------------------------
def xavier_uniform(key, fan_in, fan_out):
    bound = np.sqrt(6.0 / (fan_in + fan_out))
    return jax.random.uniform(key, (fan_in, fan_out), jnp.float32, -bound, bound)


def reference(X, H, W1, b1, W2, b2):
    dv = H.sum(1)
    de = H.sum(0)
    dvis = 1.0 / jnp.sqrt(dv + _EPS)
    dei = 1.0 / (de + _EPS)
    M = (dvis[:, None] * H * dei[None, :]) @ (dvis[:, None] * H).T
    h1 = jax.nn.relu(M @ (X @ W1) + b1)
    return jax.nn.relu(M @ (h1 @ W2) + b2)


if __name__ == "__main__":
    # Small shapes consistent with the module: N nodes, E hyperedges.
    N, E = 16, 8
    in_dim, hid_dim, out_dim = 8, 64, 32

    key = jax.random.PRNGKey(0)
    kx, kh, k1, k2 = jax.random.split(key, 4)

    X = jax.random.normal(kx, (N, in_dim), jnp.float32)
    H = jax.random.bernoulli(kh, 0.3, (N, E)).astype(jnp.float32)

    # Deterministic parameter init (xavier_uniform weights, zero biases).
    W1 = xavier_uniform(k1, in_dim, hid_dim)
    b1 = jnp.zeros((1, hid_dim), jnp.float32)
    W2 = xavier_uniform(k2, hid_dim, out_dim)
    b2 = jnp.zeros((1, out_dim), jnp.float32)

    # block_rows=8 -> 2-step grid, exercising the resident-accumulator paths.
    out = branch_hgcn(X, H, W1, b1, W2, b2, block_rows=8)
    jax.block_until_ready(out)

    ref = reference(X, H, W1, b1, W2, b2)
    np.testing.assert_allclose(np.asarray(out), np.asarray(ref),
                               rtol=2e-4, atol=2e-4)
    print("KERNEL_OK")
</pallas_src>

<mosaic_0001>
module attributes {stable_mosaic.version = 11 : i64} {
  func.func @_degree_reduce_kernel(%arg0: i32, %arg1: memref<8x8xf32, #tpu.memory_space<vmem>>, %arg2: memref<8x8xf32, #tpu.memory_space<vmem>>, %arg3: memref<8x64xf32, #tpu.memory_space<vmem>>, %arg4: memref<8x64xf32, #tpu.memory_space<vmem>>, %arg5: memref<8x1xf32, #tpu.memory_space<vmem>>) attributes {dimension_semantics = [#tpu.dimension_semantics<arbitrary>], iteration_bounds = array<i64: 2>, scalar_prefetch = 0 : i64, scratch_operands = 0 : i64, tpu.core_type = #tpu.core_type<tc>, window_params = [{transform_indices = @transform_0, window_bounds = array<i64: 8, 8>}, {transform_indices = @transform_1, window_bounds = array<i64: 8, 8>}, {pipeline_mode = #tpu.pipeline_mode<synchronous>, transform_indices = @transform_2, window_bounds = array<i64: 8, 64>}, {pipeline_mode = #tpu.pipeline_mode<synchronous>, transform_indices = @transform_3, window_bounds = array<i64: 8, 64>}, {pipeline_mode = #tpu.pipeline_mode<synchronous>, transform_indices = @transform_4, window_bounds = array<i64: 8, 1>}]} {
    %c0_i32 = arith.constant 0 : i32
    %0 = arith.cmpi eq, %arg0, %c0_i32 : i32
    %1 = arith.extui %0 : i1 to i32
    %c0_i32_0 = arith.constant 0 : i32
    %2 = arith.cmpi ne, %1, %c0_i32_0 : i32
    scf.if %2 {
      %cst_20 = arith.constant 0.000000e+00 : f32
      %26 = vector.broadcast %cst_20 : f32 to vector<8x64xf32>
      %c0_21 = arith.constant 0 : index
      %c0_22 = arith.constant 0 : index
      %27 = vector.load %arg4[%c0_21, %c0_22] : memref<8x64xf32, #tpu.memory_space<vmem>>, vector<8x64xf32>
      tpu.vector_store %arg4[%c0_21, %c0_22], %26 {strides = array<i32>} : memref<8x64xf32, #tpu.memory_space<vmem>>, vector<8x64xf32>,
      %cst_23 = arith.constant 0.000000e+00 : f32
      %28 = vector.broadcast %cst_23 : f32 to vector<8x1xf32>
      %c0_24 = arith.constant 0 : index
      %c0_25 = arith.constant 0 : index
      %29 = vector.load %arg5[%c0_24, %c0_25] : memref<8x1xf32, #tpu.memory_space<vmem>>, vector<8x1xf32>
      tpu.vector_store %arg5[%c0_24, %c0_25], %28 {strides = array<i32>} : memref<8x1xf32, #tpu.memory_space<vmem>>, vector<8x1xf32>,
    } else {
    }
    %c0 = arith.constant 0 : index
    %c0_1 = arith.constant 0 : index
    %3 = vector.load %arg2[%c0, %c0_1] : memref<8x8xf32, #tpu.memory_space<vmem>>, vector<8x8xf32>
    %cst = arith.constant dense<0.000000e+00> : vector<8xf32>
    %4 = vector.multi_reduction <add>, %3, %cst [1] : vector<8x8xf32> to vector<8xf32>
    %5 = vector.shape_cast %4 : vector<8xf32> to vector<8x1xf32>
    %cst_2 = arith.constant 9.99999974E-6 : f32
    %6 = vector.broadcast %cst_2 : f32 to vector<8x1xf32>
    %7 = arith.addf %5, %6 : vector<8x1xf32>
    %8 = math.rsqrt %7 : vector<8x1xf32>
    %cst_3 = arith.constant 1.000000e+00 : f32
    %9 = vector.broadcast %cst_3 : f32 to vector<8x1xf32>
    %c0_4 = arith.constant 0 : index
    %c0_5 = arith.constant 0 : index
    %10 = vector.load %arg5[%c0_4, %c0_5] : memref<8x1xf32, #tpu.memory_space<vmem>>, vector<8x1xf32>
    %cst_6 = arith.constant dense<0.000000e+00> : vector<8x1xf32>
    %11 = tpu.matmul %3, %9, %cst_6 {dimension_numbers = #tpu.dot_dimension_numbers<[0], [0], [1], [1], [0, 1, 1, 1], [], []>} : vector<8x8xf32>, vector<8x1xf32>, vector<8x1xf32> -> vector<8x1xf32>
    %12 = arith.addf %10, %11 : vector<8x1xf32>
    %c0_7 = arith.constant 0 : index
    %c0_8 = arith.constant 0 : index
    %13 = vector.load %arg5[%c0_7, %c0_8] : memref<8x1xf32, #tpu.memory_space<vmem>>, vector<8x1xf32>
    tpu.vector_store %arg5[%c0_7, %c0_8], %12 {strides = array<i32>} : memref<8x1xf32, #tpu.memory_space<vmem>>, vector<8x1xf32>,
    %c0_9 = arith.constant 0 : index
    %c0_10 = arith.constant 0 : index
    %14 = vector.load %arg1[%c0_9, %c0_10] : memref<8x8xf32, #tpu.memory_space<vmem>>, vector<8x8xf32>
    %c0_11 = arith.constant 0 : index
    %c0_12 = arith.constant 0 : index
    %15 = vector.load %arg3[%c0_11, %c0_12] : memref<8x64xf32, #tpu.memory_space<vmem>>, vector<8x64xf32>
    %16 = vector.broadcast %8 : vector<8x1xf32> to vector<8x8xf32>
    %17 = arith.mulf %16, %14 : vector<8x8xf32>
    %cst_13 = arith.constant dense<0.000000e+00> : vector<8x64xf32>
    %18 = tpu.matmul %17, %15, %cst_13 {dimension_numbers = #tpu.dot_dimension_numbers<[1], [0], [0], [1], [0, 0, 1, 1], [], []>} : vector<8x8xf32>, vector<8x64xf32>, vector<8x64xf32> -> vector<8x64xf32>
    %c0_14 = arith.constant 0 : index
    %c0_15 = arith.constant 0 : index
    %19 = vector.load %arg4[%c0_14, %c0_15] : memref<8x64xf32, #tpu.memory_space<vmem>>, vector<8x64xf32>
    %cst_16 = arith.constant dense<0.000000e+00> : vector<8x64xf32>
    %20 = tpu.matmul %3, %18, %cst_16 {dimension_numbers = #tpu.dot_dimension_numbers<[0], [0], [1], [1], [0, 1, 1, 1], [], []>} : vector<8x8xf32>, vector<8x64xf32>, vector<8x64xf32> -> vector<8x64xf32>
    %21 = arith.addf %19, %20 : vector<8x64xf32>
    %c0_17 = arith.constant 0 : index
    %c0_18 = arith.constant 0 : index
    %22 = vector.load %arg4[%c0_17, %c0_18] : memref<8x64xf32, #tpu.memory_space<vmem>>, vector<8x64xf32>
    tpu.vector_store %arg4[%c0_17, %c0_18], %21 {strides = array<i32>} : memref<8x64xf32, #tpu.memory_space<vmem>>, vector<8x64xf32>,
    %c1_i32 = arith.constant 1 : i32
    %23 = arith.cmpi eq, %arg0, %c1_i32 : i32
    %24 = arith.extui %23 : i1 to i32
    %c0_i32_19 = arith.constant 0 : i32
    %25 = arith.cmpi ne, %24, %c0_i32_19 : i32
    scf.if %25 {
      %c0_20 = arith.constant 0 : index
      %c0_21 = arith.constant 0 : index
      %26 = vector.load %arg5[%c0_20, %c0_21] : memref<8x1xf32, #tpu.memory_space<vmem>>, vector<8x1xf32>
      %cst_22 = arith.constant 9.99999974E-6 : f32
      %27 = vector.broadcast %cst_22 : f32 to vector<8x1xf32>
      %28 = arith.addf %26, %27 : vector<8x1xf32>
      %cst_23 = arith.constant 1.000000e+00 : f32
      %29 = vector.broadcast %cst_23 : f32 to vector<8x1xf32>
      %30 = arith.divf %29, %28 : vector<8x1xf32>
      %c0_24 = arith.constant 0 : index
      %c0_25 = arith.constant 0 : index
      %31 = vector.load %arg5[%c0_24, %c0_25] : memref<8x1xf32, #tpu.memory_space<vmem>>, vector<8x1xf32>
      tpu.vector_store %arg5[%c0_24, %c0_25], %30 {strides = array<i32>} : memref<8x1xf32, #tpu.memory_space<vmem>>, vector<8x1xf32>,
      %c0_26 = arith.constant 0 : index
      %c0_27 = arith.constant 0 : index
      %32 = vector.load %arg4[%c0_26, %c0_27] : memref<8x64xf32, #tpu.memory_space<vmem>>, vector<8x64xf32>
      %33 = vector.broadcast %30 : vector<8x1xf32> to vector<8x64xf32>
      %34 = arith.mulf %32, %33 : vector<8x64xf32>
      %c0_28 = arith.constant 0 : index
      %c0_29 = arith.constant 0 : index
      %35 = vector.load %arg4[%c0_28, %c0_29] : memref<8x64xf32, #tpu.memory_space<vmem>>, vector<8x64xf32>
      tpu.vector_store %arg4[%c0_28, %c0_29], %34 {strides = array<i32>} : memref<8x64xf32, #tpu.memory_space<vmem>>, vector<8x64xf32>,
    } else {
    }
    return
  }
  func.func @transform_0(%arg0: i32) -> (i32, i32) {
    %c0_i32 = arith.constant 0 : i32
    %c0_i32_0 = arith.constant 0 : i32
    return %arg0, %c0_i32 : i32, i32
  }
  func.func @transform_1(%arg0: i32) -> (i32, i32) {
    %c0_i32 = arith.constant 0 : i32
    %c0_i32_0 = arith.constant 0 : i32
    return %arg0, %c0_i32 : i32, i32
  }
  func.func @transform_2(%arg0: i32) -> (i32, i32) {
    %c0_i32 = arith.constant 0 : i32
    %c0_i32_0 = arith.constant 0 : i32
    %c0_i32_1 = arith.constant 0 : i32
    return %c0_i32, %c0_i32_0 : i32, i32
  }
  func.func @transform_3(%arg0: i32) -> (i32, i32) {
    %c0_i32 = arith.constant 0 : i32
    %c0_i32_0 = arith.constant 0 : i32
    %c0_i32_1 = arith.constant 0 : i32
    return %c0_i32, %c0_i32_0 : i32, i32
  }
  func.func @transform_4(%arg0: i32) -> (i32, i32) {
    %c0_i32 = arith.constant 0 : i32
    %c0_i32_0 = arith.constant 0 : i32
    %c0_i32_1 = arith.constant 0 : i32
    return %c0_i32, %c0_i32_0 : i32, i32
  }
}

</mosaic_0001>

<bundles_post_ra>
// kernel: tpu_custom_call.1
= control target key start
LH: loop header
LB: loop body
LE: loop exit
PB: predicated region body
PF: predicated region fallthrough
CT: control target
= control target key end

     0   :  { %10 = vsyncpa [#allocation3], 0  ;;  %s533_s15 = smov 0   ;;  %s586_s0 = inlined_call_operand.vmem [shape: f32[16,8], index: 0, kind: input, shape index: {}]   ;;  %s587_s1 = inlined_call_operand.vmem [shape: f32[16,8], index: 1, kind: input, shape index: {}]   ;;  %s588_s2 = inlined_call_operand.vmem [shape: f32[8,64], index: 2, kind: input, shape index: {}]   ;;  %s589_s3 = inlined_call_operand.hbm [shape: f32[8,64], index: 3, kind: output, shape index: {0}]   ;;  %s590_s4 = inlined_call_operand.vmem [shape: f32[8,1], index: 4, kind: output, shape index: {1}]  }
   0x1 LB: > { %s539_s16 = sadd.s32 4294967295, %s502_s15   ;;  %p428_p0 = scmp.ge.s32.totalorder %s502_s15, 1  ;;  %s502_s15 = sphi %s533_s15, %s16_s15  }
   0x2   : > { %p164_p1 = scmp.lt.s32.totalorder %s502_s15, 3 }
   0x4   : > { %p165_p2 = pnand %p428_p0, %p164_p1 }
   0x5   : > { %p188_p3 = scmp.lt.s32.totalorder (!%p165_p2), %s539_s16, 1  ;;  %p431_p4 = scmp.ne.s32.totalorder (!%p165_p2), %s539_s16, 0 }
   0x6   : > { %168 = sbr.rel (%p165_p2) target bundleno = 565 (0x235), region = 32 }
   0xb   : > { %s189_s17 = scalar_select %p188_p3, %s539_s16, 1 }
   0xc   : > { %199 = sbr.rel (%p431_p4) target bundleno = 20 (0x14), region = 36 }
   0xd   : > { %s429_s18 = sshll.u32 %s189_s17, 3 }
   0xe   : > { %s191_s21 = scalar_lea.vmem %s586_s0, %s429_s18  ;;  %s195_s24 = scalar_lea.vmem %s587_s1, %s429_s18 }
  0x11   : > { %vm200_vm0 = vcmask 523264   ;;  %vm202_vm1 = vcmask 7168   ;;  %v504_v0 = vmov 0.0  }
  0x12   : > { %201 = vst.msk [vmem:[#allocation2] sm:$0xff] %vm200_vm0, %v504_v0 }
  0x13   : > { %203 = vst.msk [vmem:[%s590_s4] sm:$0xff] %vm202_vm1, %v504_v0 }
  0x14 PF: > { %v204_v1 = vld [vmem:[%s195_s24] sm:$0xff]  ;;  %vm205_vm2 = vcmask 64512   ;;  %v505_v15 = vmov 1.0   ;;  %vm277_vm6 = vcmask 7168   ;;  %vm327_vm7 = vcmask 523264   ;;  %p435_p5 = scmp.ne.s32.totalorder %s539_s16, 1 }
  0x15   : > { %v206_v2 = vsel %vm205_vm2, %v204_v1, 0.0  ;;  %v280_v3 = vld [vmem:[%s588_s2] sm:$0xff]  ;;  %271 = vmatpush.msra.mxu0 %v505_v15 }
  0x16   : > { %207 = vadd.xlane.f32.xlu0 %v206_v2  ;;  %300 = vmatpush.msra.mxu1 %v280_v3  ;;  %v279_v12 = vld [vmem:[%s191_s21] sm:$0xff] }
  0x19   : > { %v305_v21 = vld [vmem:[#allocation2] sm:$0xff] }
  0x1a   : > { %v220_v18 = vld [vmem:[%s590_s4] sm:$0xff] }
  0x3f   : > { %221 = vxpose.xlu0.b32.start.end [1/1] (short) (narrow) %v204_v1, 8 }
  0x89   : > { %v208_v4 = vpop.xlane.xlu0 %207 }
  0x8a   : > { %v209_v5 = vadd.f32 1e-05, %v208_v4 }
  0x8c   : > { %459 = vrsqrt.f32 %v209_v5  ;;  %vm216_vm4 = vweird.f32 %v209_v5 }
  0x92   : > { %v460_v6 = vpop.eup %459 }
  0x93   : > { %v211_v7 = vmul.f32 %v460_v6, %v209_v5  ;;  %vm217_vm3 = vweird.f32 %v460_v6 }
  0x94   : > { %vm218_vm5 = vmor %vm216_vm4, %vm217_vm3 }
  0x95   : > { %v212_v8 = vmul.f32 %v460_v6, %v211_v7 }
  0x97   : > { %v213_v9 = vmul.f32 0.5, %v212_v8 }
  0x99   : > { %v214_v10 = vsub.f32 1.5, %v213_v9 }
  0x9b   : > { %v215_v11 = vmul.f32 %v460_v6, %v214_v10 }
  0x9d   : > { %v219_v13 = vsel %vm218_vm5, %v460_v6, %v215_v11 }
  0x9e   : > { %v281_v14 = vmul.f32 %v279_v12, %v219_v13 }
  0xa0   : > { %433 = vmatmul.msk.f32.vlgmr.msra.gmra.mxu1 %vm205_vm2, %v281_v14 }
  0xe3   : > { %v237_v16 = vpop.trf.xlu0 }
  0xe4   : > { %432 = vmatmul.msk.f32.vlgmr.msra.gmra.mxu0 %vm205_vm2, %v237_v16 }
 0x11d   : > { %v302_v17 = vpop.f32.mrf.mxu1 }
 0x11e   : > { %321 = vmatpush.msra.mxu2 %v302_v17 }
 0x11f   : > { %434 = vmatmul.msk.f32.vlgmr.msra.gmra.mxu2 %vm205_vm2, %v237_v16 }
 0x161   : > { %v273_v19 = vpop.f32.mrf.mxu0 }
 0x162   : > { %v276_v20 = vadd.f32 %v273_v19, %v220_v18 }
 0x164   : > { %278 = vst.msk [vmem:[%s590_s4] sm:$0xff] %vm277_vm6, %v276_v20 }
 0x1a1   : > { %332 = sbr.rel (%p435_p5) target bundleno = 560 (0x230), region = 40 }
 0x1a2   : > { %v323_v22 = vpop.f32.mrf.mxu2 }
 0x1a3   : > { %v326_v23 = vadd.f32 %v323_v22, %v305_v21 }
 0x1a5   : > { %328 = vst.msk [vmem:[#allocation2] sm:$0xff] %vm327_vm7, %v326_v23 }
 0x1a6   : > { %v333_v24 = vld [vmem:[%s590_s4] sm:$0xff]  ;;  %v506_v25 = vmov 0  }
 0x1a7   : > { %461 = vset.pattern.permute.xlu0 %v506_v25  ;;  %v334_v26 = vadd.f32 1e-05, %v333_v24 }
 0x1a9   : > { %462 = vrcp.f32 %v334_v26  ;;  %v346_v29 = vand.u32 2147483648, %v334_v26  ;;  %vm340_vm8 = vweird.f32 %v334_v26  ;;  %v344_v31 = vand.u32 2147483647, %v334_v26 }
 0x1ab   : > { %v347_v33 = vor.u32 1.1754944e-38, %v346_v29  ;;  %vm345_vm11 = vcmp.eq.f32.partialorder %v344_v31, 8.507059e+37 }
 0x1ac   : > { %v351_v37 = vld [vmem:[#allocation2] sm:$0xff] }
 0x1af   : > { %v463_v27 = vpop.eup %462 }
 0x1b0   : > { %v336_v28 = vmul.f32 %v463_v27, %v334_v26  ;;  %vm341_vm9 = vweird.f32 %v463_v27 }
 0x1b1   : > { %vm342_vm10 = vmor %vm340_vm8, %vm341_vm9 }
 0x1b2   : > { %v337_v30 = vsub.f32 1.0, %v336_v28 }
 0x1b4   : > { %v338_v32 = vmul.f32 %v463_v27, %v337_v30 }
 0x1b6   : > { %v339_v34 = vadd.f32 %v463_v27, %v338_v32 }
 0x1b8   : > { %v343_v35 = vsel %vm342_vm10, %v463_v27, %v339_v34 }
 0x1b9   : > { %v348_v36 = vsel %vm345_vm11, %v347_v33, %v343_v35 }
 0x1ba   : > { %354 = vperm.xlu0 %461, %v348_v36   ;;  %350 = vst.msk [vmem:[%s590_s4] sm:$0xff] %vm277_vm6, %v348_v36 }
 0x22c   : > { %v355_v38 = vpop.permute.xlu0 %354 }
 0x22d   : > { %v357_v39 = vmul.f32 %v355_v38, %v351_v37 }
 0x22f   : > { %358 = vst.msk [vmem:[#allocation2] sm:$0xff] %vm327_vm7, %v357_v39 }
 0x230 PF: > { %p444_p6 = scmp.eq.s32.totalorder %s539_s16, 1  ;;  %s507_s11 = smov [#allocation2]  }
 0x231   : > { %s365_s12 = sshll.u32 %s507_s11, 4  ;;  %s367_s17 = sshll.u32 %s589_s3, 4  ;;  %s366_s12 = int_to_ptr.vmem [resolvable:$true] %s365_s12  ;;  %s368_s17 = int_to_ptr.hbm [resolvable:$true] %s367_s17 }
 0x232   : > { %441 = dma.vmem_to_hbm [thread:$0]  (%p444_p6), %s366_s12, 128, %s368_s17, [#allocation3]  }
 0x233   : > { %497 = dma.done.wait (%p444_p6), [#allocation3], 128  }
 0x234   : > { %499 = vsyncadd (%p444_p6), [#allocation3], 4294967168 }
 0x235 PF: > { %s16_s15 = sadd.s32 1, %s502_s15  }
 0x236   : > { %p13_p7 = scmp.ge.s32.totalorder %s16_s15, 4  }
 0x238   :  { %15 = sbr.rel (!%p13_p7) target bundleno = 1 (0x1), region = 78 }
 0x23d   :  { %387 = vsyncpa [#allocation3], 1 }
 0x23e   :  { %389 = vsyncpa [#allocation3 + $0x1], 1 }

</bundles_post_ra>
